<compile_context>
chip_gen: v5e
topology: v5e:2x2
jax: 0.10.0
libtpu: 0.0.40
codegen_flags: <defaults>
</compile_context>

<pallas_src>
import functools
import math

import jax
import jax.numpy as jnp
from jax import lax
from jax.experimental import pallas as pl
from jax.experimental.pallas import tpu as pltpu


def _pick_tile(dim, pref, align):
    """Largest tile <= pref that is a multiple of `align` and divides `dim`.

    Falls back to the full dimension (always a legal Pallas block)."""
    if dim <= pref:
        return dim
    t = (pref // align) * align
    while t >= align:
        if dim % t == 0:
            return t
        t -= align
    return dim


def _vmem_limit_bytes():
    """Per-generation VMEM cap: ~75% of physical, clamped to [32, 96] MiB.

    v5e/v6e (128 MiB) -> 96 MiB; v7x (64 MiB per TC) -> 48 MiB."""
    try:
        cap = int(pltpu.get_tpu_info().vmem_capacity_bytes)
        return max(32 << 20, min(96 << 20, (cap * 3) // 4))
    except Exception:  # pragma: no cover - conservative fallback
        return 48 << 20


# --------------------------------------------------------------------------
# Tiled linear kernel: y = x @ W_t + b, with W_t pre-transposed to (K, N)
# (PyTorch nn.Linear semantics: W_t = W.T).  Grid (M/tm, N/tn, K/tk), K is
# the innermost (reduction) axis with a resident f32 VMEM accumulator.
# --------------------------------------------------------------------------
def _linear_kernel(x_ref, wt_ref, b_ref, o_ref, acc_ref):
    k_idx = pl.program_id(2)

    @pl.when(k_idx == 0)
    def _():
        acc_ref[...] = jnp.zeros(acc_ref.shape, acc_ref.dtype)

    # bf16 MXU operands, f32 accumulation.  W_t is already (K, N) bf16, so
    # this is a plain NN contraction (no in-kernel transpose/relayout).
    acc_ref[...] += jnp.dot(x_ref[...].astype(jnp.bfloat16), wt_ref[...],
                            preferred_element_type=jnp.float32)

    @pl.when(k_idx == pl.num_programs(2) - 1)
    def _():
        o_ref[...] = (acc_ref[...] + b_ref[...].astype(jnp.float32)).astype(o_ref.dtype)


def linear(x, w_t, b, *, out_dtype=None, tm=512, tn=512, tk=512):
    """x: (M, K) float, w_t: (K, N) bf16, b: (1, N) f32 -> (M, N) out_dtype."""
    M, K = x.shape
    K2, N = w_t.shape
    assert K == K2
    out_dtype = x.dtype if out_dtype is None else out_dtype
    # tm 16-aligned (bf16 sublane packing); tn/tk 128-aligned (lanes / MXU).
    tm = _pick_tile(M, tm, 16)
    tn = _pick_tile(N, tn, 128)
    tk = _pick_tile(K, tk, 128)

    return pl.pallas_call(
        _linear_kernel,
        out_shape=jax.ShapeDtypeStruct((M, N), out_dtype),
        grid=(M // tm, N // tn, K // tk),
        in_specs=[
            pl.BlockSpec((tm, tk), lambda i, j, k: (i, k)),
            pl.BlockSpec((tk, tn), lambda i, j, k: (k, j)),
            pl.BlockSpec((1, tn), lambda i, j, k: (0, j)),
        ],
        out_specs=pl.BlockSpec((tm, tn), lambda i, j, k: (i, j)),
        scratch_shapes=[pltpu.VMEM((tm, tn), jnp.float32)],
        compiler_params=pltpu.CompilerParams(
            dimension_semantics=("parallel", "parallel", "arbitrary"),
            vmem_limit_bytes=_vmem_limit_bytes()),
    )(x, w_t, b)


# --------------------------------------------------------------------------
# Flash-style attention core on the (B, S, n_units) layout.
# Grid: (batch, q_tile, kv_tile); kv_tile is the online-softmax reduction
# axis.  Heads are static d_k-wide column slices inside the kernel; running
# stats live in (n_heads, tq, *) scratch so per-kv-step updates are full
# slabs (no width-1 / sub-128 column-slice masked stores).
# --------------------------------------------------------------------------
def _mha_flash_kernel(q_ref, k_ref, v_ref, o_ref, m_sc, l_sc, acc_sc,
                      *, n_heads, d_k):
    kv_idx = pl.program_id(2)

    @pl.when(kv_idx == 0)
    def _():
        m_sc[...] = jnp.full(m_sc.shape, -jnp.inf, m_sc.dtype)
        l_sc[...] = jnp.zeros(l_sc.shape, l_sc.dtype)
        acc_sc[...] = jnp.zeros(acc_sc.shape, acc_sc.dtype)

    # Static head loop (n_heads is small here).  For n_heads >= 8 switch to
    # lax.fori_loop(..., unroll=2) over pl.ds(h * d_k, d_k) slices to keep
    # vreg pressure flat.
    for h in range(n_heads):
        lo, hi = h * d_k, (h + 1) * d_k
        qh = q_ref[:, lo:hi]   # (tq, d_k) bf16; 1/sqrt(d_k) folded into W_q/b_q
        kh = k_ref[:, lo:hi]   # (tkv, d_k) bf16
        vh = v_ref[:, lo:hi]   # (tkv, d_k) bf16

        # scores (tq, tkv): contract d_k of q against d_k of k, f32 accumulate.
        s = lax.dot_general(qh, kh,
                            dimension_numbers=(((1,), (1,)), ((), ())),
                            preferred_element_type=jnp.float32)
        # TODO(synk): optional attention `mask` would be applied here
        #   (s = s * m - 1e10 * (1 - m)); this path matches mask=None.

        m_prev = m_sc[h]                                        # (tq, 1)
        m_new = jnp.maximum(m_prev, jnp.max(s, axis=-1, keepdims=True))
        alpha = jnp.exp(m_prev - m_new)
        p = jnp.exp(s - m_new)                                  # (tq, tkv) f32

        l_sc[h] = alpha * l_sc[h] + jnp.sum(p, axis=-1, keepdims=True)
        acc_sc[h] = alpha * acc_sc[h] + lax.dot_general(
            p.astype(vh.dtype), vh,                              # bf16 PV matmul
            dimension_numbers=(((1,), (0,)), ((), ())),
            preferred_element_type=jnp.float32)
        m_sc[h] = m_new

    @pl.when(kv_idx == pl.num_programs(2) - 1)
    def _():
        # TODO(synk): F.dropout on the attention weights is skipped
        # (deterministic / eval-mode equivalent of the PyTorch module).
        for h in range(n_heads):
            lo, hi = h * d_k, (h + 1) * d_k
            inv_l = pl.reciprocal(l_sc[h], approx=True)
            o_ref[:, lo:hi] = (acc_sc[h] * inv_l).astype(o_ref.dtype)


def attention_core(q, k, v, n_heads, *, tq=256, tkv=256):
    """q: (B, Sq, U), k/v: (B, Skv, U) -> (B, Sq, U); heads packed in columns."""
    B, Sq, U = q.shape
    _, Skv, _ = k.shape
    d_k = U // n_heads
    # Larger tq raises flash arithmetic intensity (K/V HBM reads scale with
    # Sq/tq); tkv kept 128-aligned to feed the 256-wide MXU on v6e/v7x.
    # tq=tkv=256 keeps q/out/K/V tiles + the f32 accumulator well inside the
    # v7x 64 MiB per-core VMEM budget.
    tq = _pick_tile(Sq, tq, 16)
    tkv = _pick_tile(Skv, tkv, 128)

    kernel = functools.partial(_mha_flash_kernel, n_heads=n_heads, d_k=d_k)

    return pl.pallas_call(
        kernel,
        out_shape=jax.ShapeDtypeStruct((B, Sq, U), q.dtype),
        grid=(B, Sq // tq, Skv // tkv),
        in_specs=[
            pl.BlockSpec((None, tq, U), lambda b, i, j: (b, i, 0)),
            pl.BlockSpec((None, tkv, U), lambda b, i, j: (b, j, 0)),
            pl.BlockSpec((None, tkv, U), lambda b, i, j: (b, j, 0)),
        ],
        out_specs=pl.BlockSpec((None, tq, U), lambda b, i, j: (b, i, 0)),
        scratch_shapes=[
            pltpu.VMEM((n_heads, tq, 1), jnp.float32),    # running max
            pltpu.VMEM((n_heads, tq, 1), jnp.float32),    # running denom
            pltpu.VMEM((n_heads, tq, d_k), jnp.float32),  # running numerator
        ],
        compiler_params=pltpu.CompilerParams(
            dimension_semantics=("parallel", "parallel", "arbitrary"),
            vmem_limit_bytes=_vmem_limit_bytes()),
    )(q, k, v)


# --------------------------------------------------------------------------
# Full module forward
# --------------------------------------------------------------------------
def multi_headed_attention(query, key, value, params, n_heads):
    B, Sq, U = query.shape
    _, Skv, _ = key.shape
    assert U % n_heads == 0
    d_k = U // n_heads
    scale = 1.0 / math.sqrt(d_k)
    cdt = jnp.bfloat16

    # ---- one-time parameter prep (cheap relative to the matmuls):
    #   * transpose weights to (K, N) so kernels use a plain NN contraction
    #   * cast weights to bf16 (MXU-native; f32 accumulation in-kernel)
    #   * fold the 1/sqrt(d_k) attention scale into W_q / b_q
    wq_t = (params["wq"] * scale).T.astype(cdt)
    wk_t = params["wk"].T.astype(cdt)
    wv_t = params["wv"].T.astype(cdt)
    wo_t = params["wo"].T.astype(cdt)
    bq = (params["bq"] * scale).astype(jnp.float32)[None, :]
    bk = params["bk"].astype(jnp.float32)[None, :]
    bv = params["bv"].astype(jnp.float32)[None, :]
    bo = params["bo"].astype(jnp.float32)[None, :]

    if (query is key) and (key is value):
        # True self-attention: one (M, U) x (U, 3U) matmul; x is read once and
        # there is no HBM round trip for a stacked-activation tensor.
        w_qkv_t = jnp.concatenate([wq_t, wk_t, wv_t], axis=1)    # (U, 3U)
        b_qkv = jnp.concatenate([bq, bk, bv], axis=1)            # (1, 3U)
        qkv = linear(query.reshape(B * Sq, U), w_qkv_t, b_qkv,
                     out_dtype=cdt).reshape(B, Sq, 3 * U)
        # TODO(synk): when U % 128 == 0 the packed (B, S, 3U) tensor could be
        # fed to the attention kernel directly via column-offset BlockSpecs
        # (no slice copies); at small U the slices below are cheap.
        Q = qkv[:, :, :U]
        K = qkv[:, :, U:2 * U]
        V = qkv[:, :, 2 * U:]
    else:
        # Distinct q / k / v tensors (e.g. cross-attention): three separate
        # tiled calls — no stacked-activation HBM write+read.
        Q = linear(query.reshape(B * Sq, U), wq_t, bq, out_dtype=cdt).reshape(B, Sq, U)
        K = linear(key.reshape(B * Skv, U), wk_t, bk, out_dtype=cdt).reshape(B, Skv, U)
        V = linear(value.reshape(B * Skv, U), wv_t, bv, out_dtype=cdt).reshape(B, Skv, U)

    # ---- flash attention directly in the (B, S, U) layout (no head
    #      split/merge transposes); bf16 output halves the A round trip.
    A = attention_core(Q, K, V, n_heads)                         # (B, Sq, U) bf16

    # ---- output projection (f32 output to match the module's dtype)
    out = linear(A.reshape(B * Sq, U), wo_t, bo, out_dtype=jnp.float32)
    return out.reshape(B, Sq, U)


# --------------------------------------------------------------------------
# Pure-JAX reference (mirrors the PyTorch module with mask=None, no dropout)
# --------------------------------------------------------------------------
def _reference_mha(query, key, value, params, n_heads):
    B, Sq, U = query.shape
    d_k = U // n_heads

    def lin(x, w, b):
        return x @ w.T + b

    Q = lin(query, params["wq"], params["bq"])
    K = lin(key, params["wk"], params["bk"])
    V = lin(value, params["wv"], params["bv"])

    def split(x):
        return x.reshape(B, -1, n_heads, d_k).transpose(0, 2, 1, 3)

    Qh, Kh, Vh = split(Q), split(K), split(V)
    s = jnp.einsum("bhqd,bhkd->bhqk", Qh, Kh) / math.sqrt(d_k)
    p = jax.nn.softmax(s, axis=-1)
    A = jnp.einsum("bhqk,bhkd->bhqd", p, Vh)
    A = A.transpose(0, 2, 1, 3).reshape(B, Sq, U)
    return lin(A, params["wo"], params["bo"])


# --------------------------------------------------------------------------
if __name__ == "__main__":
    B, S = 2, 8
    n_heads, n_units = 4, 32

    root = jax.random.PRNGKey(0)
    keys = jax.random.split(root, 11)

    q_in = jax.random.normal(keys[0], (B, S, n_units), jnp.float32)
    k_in = jax.random.normal(keys[1], (B, S, n_units), jnp.float32)
    v_in = jax.random.normal(keys[2], (B, S, n_units), jnp.float32)

    # Deterministic nn.Linear-style init: U(-1/sqrt(in), 1/sqrt(in))
    bound = 1.0 / math.sqrt(n_units)

    def init_linear(kw, kb):
        w = jax.random.uniform(kw, (n_units, n_units), jnp.float32, -bound, bound)
        b = jax.random.uniform(kb, (n_units,), jnp.float32, -bound, bound)
        return w, b

    wq, bq = init_linear(keys[3], keys[4])
    wk, bk = init_linear(keys[5], keys[6])
    wv, bv = init_linear(keys[7], keys[8])
    wo, bo = init_linear(keys[9], keys[10])

    params = dict(wq=wq, bq=bq, wk=wk, bk=bk, wv=wv, bv=bv, wo=wo, bo=bo)

    # Path 1: distinct q/k/v tensors -> three separate projections.
    out = multi_headed_attention(q_in, k_in, v_in, params, n_heads)
    out = jax.block_until_ready(out)
    assert out.shape == (B, S, n_units)
    assert bool(jnp.all(jnp.isfinite(out)))
    ref = _reference_mha(q_in, k_in, v_in, params, n_heads)
    max_err = float(jnp.max(jnp.abs(out - ref)))
    assert max_err < 5e-2, f"separate-path mismatch: max abs err = {max_err}"

    # Path 2: true self-attention (same tensor) -> fused (M,U)x(U,3U) QKV matmul.
    out2 = multi_headed_attention(q_in, q_in, q_in, params, n_heads)
    out2 = jax.block_until_ready(out2)
    ref2 = _reference_mha(q_in, q_in, q_in, params, n_heads)
    max_err2 = float(jnp.max(jnp.abs(out2 - ref2)))
    assert max_err2 < 5e-2, f"fused-QKV-path mismatch: max abs err = {max_err2}"

    print("KERNEL_OK")
</pallas_src>

<mosaic_0001>
module attributes {stable_mosaic.version = 11 : i64} {
  func.func @_linear_kernel(%arg0: i32, %arg1: i32, %arg2: i32, %arg3: memref<16x32xf32, #tpu.memory_space<vmem>>, %arg4: memref<32x32xbf16, #tpu.memory_space<vmem>>, %arg5: memref<1x32xf32, #tpu.memory_space<vmem>>, %arg6: memref<16x32xbf16, #tpu.memory_space<vmem>>, %arg7: memref<16x32xf32, #tpu.memory_space<vmem>>) attributes {dimension_semantics = [#tpu.dimension_semantics<parallel>, #tpu.dimension_semantics<parallel>, #tpu.dimension_semantics<arbitrary>], iteration_bounds = array<i64: 1, 1, 1>, scalar_prefetch = 0 : i64, scratch_operands = 1 : i64, tpu.core_type = #tpu.core_type<tc>, window_params = [{transform_indices = @transform_0, window_bounds = array<i64: 16, 32>}, {transform_indices = @transform_1, window_bounds = array<i64: 32, 32>}, {transform_indices = @transform_2, window_bounds = array<i64: 1, 32>}, {transform_indices = @transform_3, window_bounds = array<i64: 16, 32>}]} {
    %c0_i32 = arith.constant 0 : i32
    %0 = arith.cmpi eq, %arg2, %c0_i32 : i32
    %1 = arith.extui %0 : i1 to i32
    %c0_i32_0 = arith.constant 0 : i32
    %2 = arith.cmpi ne, %1, %c0_i32_0 : i32
    scf.if %2 {
      %cst_10 = arith.constant 0.000000e+00 : f32
      %13 = vector.broadcast %cst_10 : f32 to vector<16x32xf32>
      %c0_11 = arith.constant 0 : index
      %c0_12 = arith.constant 0 : index
      %14 = vector.load %arg7[%c0_11, %c0_12] : memref<16x32xf32, #tpu.memory_space<vmem>>, vector<16x32xf32>
      tpu.vector_store %arg7[%c0_11, %c0_12], %13 {strides = array<i32>} : memref<16x32xf32, #tpu.memory_space<vmem>>, vector<16x32xf32>,
    } else {
    }
    %c0 = arith.constant 0 : index
    %c0_1 = arith.constant 0 : index
    %3 = vector.load %arg7[%c0, %c0_1] : memref<16x32xf32, #tpu.memory_space<vmem>>, vector<16x32xf32>
    %c0_2 = arith.constant 0 : index
    %c0_3 = arith.constant 0 : index
    %4 = vector.load %arg3[%c0_2, %c0_3] : memref<16x32xf32, #tpu.memory_space<vmem>>, vector<16x32xf32>
    %5 = arith.truncf %4 : vector<16x32xf32> to vector<16x32xbf16>
    %c0_4 = arith.constant 0 : index
    %c0_5 = arith.constant 0 : index
    %6 = vector.load %arg4[%c0_4, %c0_5] : memref<32x32xbf16, #tpu.memory_space<vmem>>, vector<32x32xbf16>
    %cst = arith.constant dense<0.000000e+00> : vector<16x32xf32>
    %7 = tpu.matmul %5, %6, %cst {dimension_numbers = #tpu.dot_dimension_numbers<[1], [0], [0], [1], [0, 0, 1, 1], [], []>} : vector<16x32xbf16>, vector<32x32xbf16>, vector<16x32xf32> -> vector<16x32xf32>
    %8 = arith.addf %3, %7 : vector<16x32xf32>
    %c0_6 = arith.constant 0 : index
    %c0_7 = arith.constant 0 : index
    %9 = vector.load %arg7[%c0_6, %c0_7] : memref<16x32xf32, #tpu.memory_space<vmem>>, vector<16x32xf32>
    tpu.vector_store %arg7[%c0_6, %c0_7], %8 {strides = array<i32>} : memref<16x32xf32, #tpu.memory_space<vmem>>, vector<16x32xf32>,
    %c0_i32_8 = arith.constant 0 : i32
    %10 = arith.cmpi eq, %arg2, %c0_i32_8 : i32
    %11 = arith.extui %10 : i1 to i32
    %c0_i32_9 = arith.constant 0 : i32
    %12 = arith.cmpi ne, %11, %c0_i32_9 : i32
    scf.if %12 {
      %c0_10 = arith.constant 0 : index
      %c0_11 = arith.constant 0 : index
      %13 = vector.load %arg7[%c0_10, %c0_11] : memref<16x32xf32, #tpu.memory_space<vmem>>, vector<16x32xf32>
      %c0_12 = arith.constant 0 : index
      %c0_13 = arith.constant 0 : index
      %14 = vector.load %arg5[%c0_12, %c0_13] : memref<1x32xf32, #tpu.memory_space<vmem>>, vector<1x32xf32>
      %15 = vector.broadcast %14 : vector<1x32xf32> to vector<16x32xf32>
      %16 = arith.addf %13, %15 : vector<16x32xf32>
      %17 = arith.truncf %16 : vector<16x32xf32> to vector<16x32xbf16>
      %c0_14 = arith.constant 0 : index
      %c0_15 = arith.constant 0 : index
      %18 = vector.load %arg6[%c0_14, %c0_15] : memref<16x32xbf16, #tpu.memory_space<vmem>>, vector<16x32xbf16>
      tpu.vector_store %arg6[%c0_14, %c0_15], %17 {strides = array<i32>} : memref<16x32xbf16, #tpu.memory_space<vmem>>, vector<16x32xbf16>,
    } else {
    }
    return
  }
  func.func @transform_0(%arg0: i32, %arg1: i32, %arg2: i32) -> (i32, i32) {
    %c0_i32 = arith.constant 0 : i32
    return %arg0, %arg2 : i32, i32
  }
  func.func @transform_1(%arg0: i32, %arg1: i32, %arg2: i32) -> (i32, i32) {
    %c0_i32 = arith.constant 0 : i32
    return %arg2, %arg1 : i32, i32
  }
  func.func @transform_2(%arg0: i32, %arg1: i32, %arg2: i32) -> (i32, i32) {
    %c0_i32 = arith.constant 0 : i32
    %c0_i32_0 = arith.constant 0 : i32
    return %c0_i32, %arg1 : i32, i32
  }
  func.func @transform_3(%arg0: i32, %arg1: i32, %arg2: i32) -> (i32, i32) {
    %c0_i32 = arith.constant 0 : i32
    return %arg0, %arg1 : i32, i32
  }
}

</mosaic_0001>

<bundles_post_ra>
// kernel: tpu_custom_call.1
= control target key start
LH: loop header
LB: loop body
LE: loop exit
PB: predicated region body
PF: predicated region fallthrough
CT: control target
= control target key end

     0   :  { %8 = vsyncpa [#allocation4], 0  ;;  %s283_s0 = inlined_call_operand.hbm [shape: f32[16,32], index: 0, kind: input, shape index: {}]   ;;  %s284_s1 = inlined_call_operand.hbm [shape: bf16[32,32], index: 1, kind: input, shape index: {}]   ;;  %s285_s2 = inlined_call_operand.vmem [shape: f32[1,32], index: 2, kind: input, shape index: {}]   ;;  %s286_s3 = inlined_call_operand.hbm [shape: bf16[16,32], index: 3, kind: output, shape index: {}]  }
   0x1   :  { %9 = vsyncpa [#allocation7], 0 }
   0x2   :  { %10 = vsyncpa [#allocation5], 0  ;;  %s15_s14 = sshll.u32 %s283_s0, 4  ;;  %s232_s15 = smov [#allocation3]   ;;  %s16_s14 = int_to_ptr.hbm [resolvable:$true] %s15_s14 }
   0x3   :  { %s17_s16 = sshll.u32 %s232_s15, 4  ;;  %s28_s19 = sshll.u32 %s284_s1, 4  ;;  %s18_s16 = int_to_ptr.vmem [resolvable:$true] %s17_s16  ;;  %s29_s19 = int_to_ptr.hbm [resolvable:$true] %s28_s19 }
   0x4   :  { %s233_s20 = smov 128   ;;  %s234_s21 = smov 8  }
   0x5   :  { %23 = dma.hbm_to_vmem [thread:$0]  %s16_s14, 256, %s18_s16, [#allocation4], %s233_s20, %s233_s20, %s234_s21  }
   0x6   :  { %s235_s22 = smov [#allocation6]   ;;  %s236_s24 = smov 64  }
   0x7   :  { %s30_s23 = sshll.u32 %s235_s22, 4  ;;  %s237_s25 = smov 4   ;;  %s31_s23 = int_to_ptr.vmem [resolvable:$true] %s30_s23 }
   0x8   :  { %36 = dma.hbm_to_vmem [thread:$0]  %s29_s19, 256, %s31_s23, [#allocation7], %s236_s24, %s236_s24, %s237_s25  }
   0x9   :  { %226 = dma.done.wait [#allocation4], 256  }
   0xa   :  { %227 = vsyncadd [#allocation4], 4294967040 }
   0xb   :  { %228 = dma.done.wait [#allocation7], 256  }
   0xc   :  { %229 = vsyncadd [#allocation7], 4294967040  ;;  %vm52_vm0 = vcmask 261120   ;;  %v238_v0 = vmov 0.0   ;;  %v144_v1 = vld [vmem:[#allocation6 + $0x8] sm:$0xff]  ;;  %v143_v2 = vld [vmem:[#allocation6] sm:$0xff] }
   0xd   :  { %53 = vst.msk [vmem:[#allocation2] sm:$0xff] %vm52_vm0, %v238_v0  ;;  %86 = vmatpush.bf16.msra.mxu0 %v144_v1  ;;  %v57_v3 = vld [vmem:[#allocation3] sm:$0xff]  ;;  %v58_v4 = vld [vmem:[#allocation3 + $0x8] sm:$0xff]  ;;  %v153_v10 = vld [vmem:[%s285_s2] ss:$0 sm:$0xff]  ;;  %vm111_vm1 = vcmask 257024  }
   0xe   :  { %54 = vst.msk [vmem:[#allocation2 + $0x8] sm:$0xff] %vm52_vm0, %v238_v0  ;;  %v59_v5 = vpack.c.bf16 %v58_v4, %v57_v3  ;;  %s239_s26 = smov [#allocation8]   ;;  %s120_s30 = sshll.u32 %s286_s3, 4  ;;  %s121_s30 = int_to_ptr.hbm [resolvable:$true] %s120_s30 }
   0xf   :  { %s118_s27 = sshll.u32 %s239_s26, 4  ;;  %s119_s27 = int_to_ptr.vmem [resolvable:$true] %s118_s27 }
  0x11   :  { %87 = vmatpush.bf16.msra.mxu0 %v143_v2 }
  0x14   :  { %142 = vmatmul.msk.bf16.vlgmr.msra.gmra.mxu0 %vm52_vm0, %v59_v5  ;;  %v55_v6 = vld [vmem:[#allocation2] sm:$0xff] }
  0x15   :  { %v56_v9 = vld [vmem:[#allocation2 + $0x8] sm:$0xff] }
  0x91   :  { %v89_v7 = vpop.f32.mrf.mxu0 }
  0x92   :  { %v94_v8 = vadd.f32 %v89_v7, %v55_v6 }
  0x94   :  { %96 = vst.msk [vmem:[#allocation2] sm:$0xff] %vm52_vm0, %v94_v8 }
  0x99   :  { %v91_v11 = vpop.f32.mrf.mxu0 }
  0x9a   :  { %v95_v12 = vadd.f32 %v91_v11, %v56_v9 }
  0x9b   :  { %v101_v13 = vld [vmem:[#allocation2] sm:$0xff] }
  0x9c   :  { %97 = vst.msk [vmem:[#allocation2 + $0x8] sm:$0xff] %vm52_vm0, %v95_v12  ;;  %v107_v14 = vadd.f32 %v153_v10, %v101_v13 }
  0x9e   :  { %v109_v15 = vpack.c.bf16 %v107_v14, %v107_v14 }
  0xa0   :  { %112 = vst.msk [vmem:[#allocation8] sm:$0xf] %vm111_vm1, %v109_v15 }
  0xa3   :  { %v102_v16 = vld [vmem:[#allocation2 + $0x8] sm:$0xff] }
  0xa4   :  { %v108_v17 = vadd.f32 %v153_v10, %v102_v16 }
  0xa6   :  { %v110_v18 = vpack.c.bf16 %v108_v17, %v108_v17 }
  0xa8   :  { %113 = vst.msk [vmem:[#allocation8 + $0x4] sm:$0xf] %vm111_vm1, %v110_v18 }
  0xa9   :  { %126 = dma.vmem_to_hbm [thread:$0]  %s119_s27, 128, %s121_s30, [#allocation5], %s236_s24, %s236_s24, %s237_s25  }
  0xaa   :  { %230 = dma.done.wait [#allocation5], 128  }
  0xab   :  { %231 = vsyncadd [#allocation5], 4294967168 }
  0xac   :  { %131 = vsyncpa [#allocation4], 1 }
  0xad   :  { %132 = vsyncpa [#allocation7], 1 }
  0xae   :  { %133 = vsyncpa [#allocation5], 1 }

</bundles_post_ra>
